<compile_context>
chip_gen: v7x
topology: tpu7x:2x2x1
jax: 0.10.0
libtpu: 0.0.40
codegen_flags: <defaults>
</compile_context>

<pallas_src>
import jax
import jax.numpy as jnp
from jax.experimental import pallas as pl
from jax.experimental.pallas import tpu as pltpu


# ------------------------------ math helper ----------------------------------
def _gelu_math_f32(x):
    # x is f32. tanh goes to the EUP; the rest is VPU work.
    c = jnp.float32(jnp.sqrt(2.0 / jnp.pi))
    return 0.5 * x * (1.0 + jnp.tanh(c * (x + 0.044715 * (x * x * x))))


# --------------------------------- kernel ------------------------------------
def gelu_kernel(x_ref, o_ref):
    # Keep elementwise math in f32 regardless of storage dtype
    # (v5e VPU/EUP have no bf16 path; f32 also matches PyTorch numerics).
    x = x_ref[...].astype(jnp.float32)
    o_ref[...] = _gelu_math_f32(x).astype(o_ref.dtype)


# -------------------------------- wrapper -------------------------------------
def pallas_gelu(x, *, lanes=1024, tile_rows=512):
    """Elementwise tanh-GELU via a tiled, lane-dense Pallas TPU kernel."""
    orig_shape = x.shape
    dtype = x.dtype
    n = x.size
    if n == 0:
        return x

    cols = lanes
    rows = pl.cdiv(n, cols)

    # Tile rows: multiple of 8 (sublane), capped at tile_rows, and covering the
    # whole row count for small inputs so the grid collapses to a single block.
    tr = min(tile_rows, pl.cdiv(rows, 8) * 8)
    rows_p = pl.cdiv(rows, tr) * tr
    padded = rows_p * cols

    flat = jnp.ravel(x)  # contiguous reshape: free
    needs_pad = padded != n
    if needs_pad:
        flat = jnp.pad(flat, (0, padded - n))
    x2d = flat.reshape(rows_p, cols)

    grid = (rows_p // tr,)
    itemsize = jnp.dtype(dtype).itemsize
    cost = pl.CostEstimate(
        flops=8 * padded,              # ~8 VPU ops per element
        transcendentals=padded,        # one tanh per element
        bytes_accessed=2 * padded * itemsize,
    )

    out2d = pl.pallas_call(
        gelu_kernel,
        out_shape=jax.ShapeDtypeStruct((rows_p, cols), dtype),
        grid=grid,
        in_specs=[pl.BlockSpec((tr, cols), lambda i: (i, 0))],
        out_specs=pl.BlockSpec((tr, cols), lambda i: (i, 0)),
        compiler_params=pltpu.CompilerParams(
            dimension_semantics=("parallel",),      # megacore-shardable on v7x
            vmem_limit_bytes=32 * 1024 * 1024,      # ~8 MiB needed w/ double buffering
        ),
        cost_estimate=cost,
    )(x2d)

    if needs_pad:
        return out2d.reshape(-1)[:n].reshape(orig_shape)
    return out2d.reshape(orig_shape)  # contiguous reshape: free


# ------------------------------ pure-JAX reference -----------------------------
def gelu_ref(x):
    return _gelu_math_f32(x.astype(jnp.float32)).astype(x.dtype)


# ----------------------------------- main --------------------------------------
if __name__ == "__main__":
    key = jax.random.PRNGKey(0)

    # Shapes consistent with GPT feed-forward GELU use
    # (batch=2, seq=8, 4*hidden with hidden=32 -> 128), plus:
    #  - a ragged shape exercising the pad/unpad path,
    #  - a larger shape exercising the multi-tile grid (zero-pad fast path),
    #  - a bf16 case.
    test_cases = [
        ((2, 8, 128), jnp.float32),
        ((3, 5, 37), jnp.float32),
        ((4, 512, 1024), jnp.float32),
        ((2, 8, 128), jnp.bfloat16),
    ]

    for i, (shape, dtype) in enumerate(test_cases):
        k = jax.random.fold_in(key, i)
        x = jax.random.normal(k, shape, dtype=jnp.float32).astype(dtype)

        y = jax.block_until_ready(pallas_gelu(x))
        ref = gelu_ref(x)

        assert y.shape == x.shape and y.dtype == x.dtype
        tol = 2e-2 if dtype == jnp.bfloat16 else 1e-5
        assert jnp.allclose(y.astype(jnp.float32), ref.astype(jnp.float32),
                            rtol=tol, atol=tol), f"mismatch for {shape} {dtype}"

    print("KERNEL_OK")
</pallas_src>

<mosaic_0001>
module attributes {stable_mosaic.version = 11 : i64} {
  func.func @gelu_kernel(%arg0: i32, %arg1: memref<8x1024xf32, #tpu.memory_space<vmem>>, %arg2: memref<8x1024xf32, #tpu.memory_space<vmem>>) attributes {dimension_semantics = [#tpu.dimension_semantics<parallel>], iteration_bounds = array<i64: 1>, scalar_prefetch = 0 : i64, scratch_operands = 0 : i64, tpu.core_type = #tpu.core_type<tc>, window_params = [{transform_indices = @transform_0, window_bounds = array<i64: 8, 1024>}, {transform_indices = @transform_1, window_bounds = array<i64: 8, 1024>}]} {
    %c0 = arith.constant 0 : index
    %c0_0 = arith.constant 0 : index
    %0 = vector.load %arg1[%c0, %c0_0] : memref<8x1024xf32, #tpu.memory_space<vmem>>, vector<8x1024xf32>
    %cst = arith.constant 0.636619746 : f32
    %1 = math.sqrt %cst : f32
    %cst_1 = arith.constant 5.000000e-01 : f32
    %2 = vector.broadcast %cst_1 : f32 to vector<8x1024xf32>
    %3 = arith.mulf %2, %0 : vector<8x1024xf32>
    %4 = arith.mulf %0, %0 : vector<8x1024xf32>
    %5 = arith.mulf %4, %0 : vector<8x1024xf32>
    %cst_2 = arith.constant 4.471500e-02 : f32
    %6 = vector.broadcast %cst_2 : f32 to vector<8x1024xf32>
    %7 = arith.mulf %6, %5 : vector<8x1024xf32>
    %8 = arith.addf %0, %7 : vector<8x1024xf32>
    %9 = vector.broadcast %1 : f32 to vector<8x1024xf32>
    %10 = arith.mulf %9, %8 : vector<8x1024xf32>
    %11 = math.tanh %10 : vector<8x1024xf32>
    %cst_3 = arith.constant 1.000000e+00 : f32
    %12 = vector.broadcast %cst_3 : f32 to vector<8x1024xf32>
    %13 = arith.addf %12, %11 : vector<8x1024xf32>
    %14 = arith.mulf %3, %13 : vector<8x1024xf32>
    %c0_4 = arith.constant 0 : index
    %c0_5 = arith.constant 0 : index
    %15 = vector.load %arg2[%c0_4, %c0_5] : memref<8x1024xf32, #tpu.memory_space<vmem>>, vector<8x1024xf32>
    tpu.vector_store %arg2[%c0_4, %c0_5], %14 {strides = array<i32>} : memref<8x1024xf32, #tpu.memory_space<vmem>>, vector<8x1024xf32>,
    return
  }
  func.func @transform_0(%arg0: i32) -> (i32, i32) {
    %c0_i32 = arith.constant 0 : i32
    %c0_i32_0 = arith.constant 0 : i32
    return %arg0, %c0_i32 : i32, i32
  }
  func.func @transform_1(%arg0: i32) -> (i32, i32) {
    %c0_i32 = arith.constant 0 : i32
    %c0_i32_0 = arith.constant 0 : i32
    return %arg0, %c0_i32 : i32, i32
  }
}

</mosaic_0001>

<bundles_post_ra>
// kernel: tpu_custom_call.1
= control target key start
LH: loop header
LB: loop body
LE: loop exit
PB: predicated region body
PF: predicated region fallthrough
CT: control target
= control target key end

     0   :  { %6 = vsyncpa [#allocation3], 0  ;;  %s240_s0 = inlined_call_operand.hbm [shape: f32[8,1024], index: 0, kind: input, shape index: {}]   ;;  %s241_s1 = inlined_call_operand.hbm [shape: f32[8,1024], index: 1, kind: output, shape index: {}]  }
   0x1   :  { %7 = vsyncpa [#allocation4], 0  ;;  %s190_s6 = smov [#allocation2]   ;;  %s142_s10 = scalar_lea.hbm %s240_s0, 1024 }
   0x2   :  { %s14_s7 = sshll.u32 %s190_s6, 4  ;;  %p143_p0 = scmp.ne.s32.totalorder %s240_s0, %s142_s10  ;;  %s15_s7 = int_to_ptr.vmem [resolvable:$true] %s14_s7 }
   0x3   :  { %p146_p1 = scmp.lt.u32.totalorder %s142_s10, %s240_s0 }
   0x5   :  { %p148_p2 = pnand %p146_p1, %p143_p0 }
   0x7   :  { %151 = shalt.err (!%p148_p2)
}
   0x8   :  { %s152_s15 = scalar_lea.vmem %s15_s7, 1024  ;;  %p157_p4 = scmp.lt.s32.totalorder %s15_s7, %s15_s7 }
   0x9   :  { %p153_p3 = scmp.ne.s32.totalorder %s15_s7, %s152_s15  ;;  %p158_p5 = scmp.lt.s32.totalorder %s152_s15, %s152_s15 }
   0xb   :  { %p159_p6 = por %p158_p5, %p157_p4 }
   0xd   :  { %p160_p7 = pnand %p159_p6, %p153_p3 }
   0xf   :  { %163 = shalt.err (!%p160_p7)
}
  0x10   :  { %17 = dma.hbm_to_vmem [thread:$0]  %s240_s0, 1024, %s15_s7, [#allocation3]  }
  0x11   :  { %186 = dma.done.wait [#allocation3], 1024  }
  0x12   :  { %187 = vsyncadd [#allocation3], 4294966272  ;;  %v21_v0 = vld [vmem:[#allocation2] sm:$0xff]  ;;  %v22_v1 = vld [vmem:[#allocation2 + $0x8] sm:$0xff]  ;;  %s191_s0 = smov [#allocation5]  }
  0x13   :  { %v23_v2 = vld [vmem:[#allocation2 + $0x10] sm:$0xff]  ;;  %v37_v3 = vmul.f32 %v21_v0, %v21_v0  ;;  %v38_v4 = vmul.f32 %v22_v1, %v22_v1  ;;  %v24_v5 = vld [vmem:[#allocation2 + $0x18] sm:$0xff]  ;;  %v25_v6 = vld [vmem:[#allocation2 + $0x20] sm:$0xff]  ;;  %v29_v48 = vmul.f32 0.5, %v21_v0  ;;  %v30_v50 = vmul.f32 0.5, %v22_v1  ;;  %s115_s18 = sshll.u32 %s191_s0, 4  ;;  %s116_s18 = int_to_ptr.vmem [resolvable:$true] %s115_s18 }
  0x14   :  { %v214_v7 = vld [vmem:[#allocation2 + $0x28] sm:$0xff]  ;;  %v39_v8 = vmul.f32 %v23_v2, %v23_v2  ;;  %v40_v9 = vmul.f32 %v24_v5, %v24_v5  ;;  %v41_v12 = vmul.f32 %v25_v6, %v25_v6  ;;  %v216_v13 = vld [vmem:[#allocation2 + $0x30] sm:$0xff]  ;;  %v28_v24 = vld [vmem:[#allocation2 + $0x38] sm:$0xff]  ;;  %v31_v53 = vmul.f32 0.5, %v23_v2  ;;  %s164_s19 = scalar_lea.vmem %s116_s18, 1024  ;;  %p169_p9 = scmp.lt.s32.totalorder %s116_s18, %s116_s18 }
  0x15   :  { %v45_v10 = vmul.f32 %v37_v3, %v21_v0  ;;  %v46_v11 = vmul.f32 %v38_v4, %v22_v1  ;;  %v42_v16 = vmul.f32 %v214_v7, %v214_v7  ;;  %v43_v23 = vmul.f32 %v216_v13, %v216_v13  ;;  %p165_p8 = scmp.ne.s32.totalorder %s116_s18, %s164_s19  ;;  %p170_p10 = scmp.lt.s32.totalorder %s164_s19, %s164_s19 }
  0x16   :  { %v47_v14 = vmul.f32 %v39_v8, %v23_v2  ;;  %v48_v15 = vmul.f32 %v40_v9, %v24_v5  ;;  %v49_v19 = vmul.f32 %v41_v12, %v25_v6  ;;  %v44_v35 = vmul.f32 %v28_v24, %v28_v24 }
  0x17   :  { %v53_v17 = vmul.f32 0.044715, %v45_v10  ;;  %v54_v18 = vmul.f32 0.044715, %v46_v11  ;;  %v50_v22 = vmul.f32 %v42_v16, %v214_v7  ;;  %v51_v31 = vmul.f32 %v43_v23, %v216_v13  ;;  %p171_p11 = por %p170_p10, %p169_p9 }
  0x18   :  { %v55_v20 = vmul.f32 0.044715, %v47_v14  ;;  %v56_v21 = vmul.f32 0.044715, %v48_v15  ;;  %v57_v27 = vmul.f32 0.044715, %v49_v19  ;;  %v52_v41 = vmul.f32 %v44_v35, %v28_v24 }
  0x19   :  { %v61_v25 = vadd.f32 %v53_v17, %v21_v0  ;;  %v62_v26 = vadd.f32 %v54_v18, %v22_v1  ;;  %v58_v30 = vmul.f32 0.044715, %v50_v22  ;;  %v59_v39 = vmul.f32 0.044715, %v51_v31  ;;  %p172_p12 = pnand %p171_p11, %p165_p8 }
  0x1a   :  { %v63_v28 = vadd.f32 %v55_v20, %v23_v2  ;;  %v64_v29 = vadd.f32 %v56_v21, %v24_v5  ;;  %v65_v34 = vadd.f32 %v57_v27, %v25_v6  ;;  %v60_v44 = vmul.f32 0.044715, %v52_v41 }
  0x1b   :  { %v69_v32 = vmul.f32 0.7978845, %v61_v25  ;;  %v70_v33 = vmul.f32 0.7978845, %v62_v26  ;;  %v66_v38 = vadd.f32 %v58_v30, %v214_v7  ;;  %v67_v43 = vadd.f32 %v59_v39, %v216_v13 }
  0x1c   :  { %v71_v36 = vmul.f32 0.7978845, %v63_v28  ;;  %v72_v37 = vmul.f32 0.7978845, %v64_v29  ;;  %v73_v40 = vmul.f32 0.7978845, %v65_v34  ;;  %v68_v46 = vadd.f32 %v60_v44, %v28_v24 }
  0x1d   :  { %126 = vtanh.f32 %v69_v32  ;;  %v74_v42 = vmul.f32 0.7978845, %v66_v38  ;;  %v75_v45 = vmul.f32 0.7978845, %v67_v43  ;;  %v32_v56 = vmul.f32 0.5, %v24_v5 }
  0x1e   :  { %128 = vtanh.f32 %v70_v33  ;;  %v76_v47 = vmul.f32 0.7978845, %v68_v46  ;;  %v33_v60 = vmul.f32 0.5, %v25_v6  ;;  %v34_v3 = vmul.f32 0.5, %v214_v7 }
  0x1f   :  { %130 = vtanh.f32 %v71_v36  ;;  %v35_v1 = vmul.f32 0.5, %v216_v13  ;;  %v36_v12 = vmul.f32 0.5, %v28_v24 }
  0x20   :  { %132 = vtanh.f32 %v72_v37 }
  0x21   :  { %134 = vtanh.f32 %v73_v40 }
  0x22   :  { %136 = vtanh.f32 %v74_v42 }
  0x23   :  { %138 = vtanh.f32 %v75_v45 }
  0x24   :  { %140 = vtanh.f32 %v76_v47 }
  0x27   :  { %v127_v49 = vpop.eup %126 }
  0x28   :  { %v129_v51 = vpop.eup %128  ;;  %v85_v52 = vadd.f32 1.0, %v127_v49 }
  0x29   :  { %v131_v54 = vpop.eup %130  ;;  %v86_v55 = vadd.f32 1.0, %v129_v51 }
  0x2a   :  { %v133_v57 = vpop.eup %132  ;;  %v93_v58 = vmul.f32 %v85_v52, %v29_v48  ;;  %v87_v59 = vadd.f32 1.0, %v131_v54 }
  0x2b   :  { %v135_v61 = vpop.eup %134  ;;  %v94_v62 = vmul.f32 %v86_v55, %v30_v50  ;;  %v88_v63 = vadd.f32 1.0, %v133_v57 }
  0x2c   :  { %v137_v4 = vpop.eup %136  ;;  %101 = vst [vmem:[#allocation5] sm:$0xff] %v93_v58  ;;  %v95_v0 = vmul.f32 %v87_v59, %v31_v53  ;;  %v89_v8 = vadd.f32 1.0, %v135_v61 }
  0x2d   :  { %v139_v9 = vpop.eup %138  ;;  %102 = vst [vmem:[#allocation5 + $0x8] sm:$0xff] %v94_v62  ;;  %v96_v2 = vmul.f32 %v88_v63, %v32_v56  ;;  %v90_v10 = vadd.f32 1.0, %v137_v4 }
  0x2e   :  { %103 = vst [vmem:[#allocation5 + $0x10] sm:$0xff] %v95_v0  ;;  %v97_v5 = vmul.f32 %v89_v8, %v33_v60  ;;  %v91_v11 = vadd.f32 1.0, %v139_v9  ;;  %v141_v6 = vpop.eup %140 }
  0x2f   :  { %104 = vst [vmem:[#allocation5 + $0x18] sm:$0xff] %v96_v2  ;;  %v98_v14 = vmul.f32 %v90_v10, %v34_v3  ;;  %v92_v15 = vadd.f32 1.0, %v141_v6 }
  0x30   :  { %105 = vst [vmem:[#allocation5 + $0x20] sm:$0xff] %v97_v5  ;;  %v99_v7 = vmul.f32 %v91_v11, %v35_v1 }
  0x31   :  { %106 = vst [vmem:[#allocation5 + $0x28] sm:$0xff] %v98_v14  ;;  %v100_v16 = vmul.f32 %v92_v15, %v36_v12 }
  0x32   :  { %107 = vst [vmem:[#allocation5 + $0x30] sm:$0xff] %v99_v7 }
  0x33   :  { %108 = vst [vmem:[#allocation5 + $0x38] sm:$0xff] %v100_v16 }
  0x34   :  { %175 = shalt.err (!%p172_p12)
}
  0x35   :  { %s176_s22 = scalar_lea.hbm %s241_s1, 1024 }
  0x36   :  { %p177_p13 = scmp.ne.s32.totalorder %s241_s1, %s176_s22  ;;  %p180_p0 = scmp.lt.u32.totalorder %s176_s22, %s241_s1 }
  0x38   :  { %p182_p1 = pnand %p180_p0, %p177_p13 }
  0x3a   :  { %185 = shalt.err (!%p182_p1)
}
  0x3b   :  { %118 = dma.vmem_to_hbm [thread:$0]  %s116_s18, 1024, %s241_s1, [#allocation4]  }
  0x3c   :  { %188 = dma.done.wait [#allocation4], 1024  }
  0x3d   :  { %189 = vsyncadd [#allocation4], 4294966272 }
  0x3e   :  { %122 = vsyncpa [#allocation3], 1 }
  0x3f   :  { %123 = vsyncpa [#allocation4], 1 }

</bundles_post_ra>
